<compile_context>
chip_gen: v7x
topology: tpu7x:2x2x1
jax: 0.10.0
libtpu: 0.0.40
codegen_flags: <defaults>
</compile_context>

<pallas_src>
import functools
import math

import jax
import jax.numpy as jnp
from jax import lax
from jax.experimental import pallas as pl
from jax.experimental.pallas import tpu as pltpu


# ----------------------------------------------------------------------------
# Generation-aware VMEM budget and tiling helpers.
# ----------------------------------------------------------------------------
def _default_vmem_limit():
    try:
        info = pltpu.get_tpu_info()
        cap = getattr(info, "vmem_capacity_bytes", None)
        if cap:
            return int(cap) * 3 // 4          # leave ~25% headroom
    except Exception:
        pass
    return 48 * 1024 * 1024                   # safe on every generation

_VMEM_LIMIT = _default_vmem_limit()
_LARGE_VMEM = _VMEM_LIMIT >= 72 * 1024 * 1024   # v5e / v6e (128 MiB physical)

_LIN_TM = 512 if _LARGE_VMEM else 256
_LIN_TN = 256
_LIN_TK = 1024 if _LARGE_VMEM else 512


def _tile(dim, target, align):
    """Largest divisor of `dim` that is a multiple of `align` and <= target.

    Falls back to the full dim only when dim <= target or dim is not
    align-divisible (small / irregular dims)."""
    if dim <= target:
        return dim
    if dim % align:
        return dim
    t = target - (target % align)
    for cand in range(t, align - 1, -align):
        if dim % cand == 0:
            return cand
    return dim


def _seq_tile(dim, target):
    return _tile(dim, target, 8)


# ----------------------------------------------------------------------------
# Tiled linear:  (M, K) @ (K, N) -> (M, N), f32 accumulator, K-reduction grid.
# ----------------------------------------------------------------------------
def _linear_kernel(x_ref, w_ref, o_ref, acc_ref):
    @pl.when(pl.program_id(2) == 0)
    def _():
        acc_ref[...] = jnp.zeros_like(acc_ref)

    acc_ref[...] += jnp.dot(x_ref[...], w_ref[...],
                            preferred_element_type=jnp.float32)

    @pl.when(pl.program_id(2) == pl.num_programs(2) - 1)
    def _():
        o_ref[...] = acc_ref[...].astype(o_ref.dtype)


def linear(x2d, w, *, tm=None, tn=None, tk=None):
    M, K = x2d.shape
    K2, N = w.shape
    assert K == K2
    tm = _tile(M, tm if tm is not None else _LIN_TM, 8)
    tn = _tile(N, tn if tn is not None else _LIN_TN, 128)
    tk = _tile(K, tk if tk is not None else _LIN_TK, 128)
    grid = (M // tm, N // tn, K // tk)
    itemsize = x2d.dtype.itemsize
    ce = pl.CostEstimate(
        flops=2 * M * N * K,
        transcendentals=0,
        bytes_accessed=(M * K + K * N + M * N) * itemsize,
    )
    return pl.pallas_call(
        _linear_kernel,
        out_shape=jax.ShapeDtypeStruct((M, N), x2d.dtype),
        grid_spec=pltpu.PrefetchScalarGridSpec(
            num_scalar_prefetch=0,
            grid=grid,
            in_specs=[
                pl.BlockSpec((tm, tk), lambda i, j, k: (i, k)),
                pl.BlockSpec((tk, tn), lambda i, j, k: (k, j)),
            ],
            out_specs=pl.BlockSpec((tm, tn), lambda i, j, k: (i, j)),
            scratch_shapes=[pltpu.VMEM((tm, tn), jnp.float32)],
        ),
        compiler_params=pltpu.CompilerParams(
            dimension_semantics=("parallel", "parallel", "arbitrary"),
            vmem_limit_bytes=_VMEM_LIMIT,
        ),
        cost_estimate=ce,
    )(x2d, w)


# ----------------------------------------------------------------------------
# Fused Q/K/V projection: one launch, M-axis grid (pipelined loads), three
# MXU matmuls per step, three outputs.
# ----------------------------------------------------------------------------
def _qkv_proj_kernel(q_ref, k_ref, v_ref, wq_ref, wk_ref, wv_ref,
                     qo_ref, ko_ref, vo_ref):
    qo_ref[...] = jnp.dot(q_ref[...], wq_ref[...],
                          preferred_element_type=jnp.float32).astype(qo_ref.dtype)
    ko_ref[...] = jnp.dot(k_ref[...], wk_ref[...],
                          preferred_element_type=jnp.float32).astype(ko_ref.dtype)
    vo_ref[...] = jnp.dot(v_ref[...], wv_ref[...],
                          preferred_element_type=jnp.float32).astype(vo_ref.dtype)


def qkv_projection(q2d, k2d, v2d, Wq, Wk, Wv):
    Mq, Dq = q2d.shape
    Mk, Dk = k2d.shape
    Dv = v2d.shape[1]
    Nq, Nk, Nv = Wq.shape[1], Wk.shape[1], Wv.shape[1]
    itemsize = q2d.dtype.itemsize
    w_bytes = itemsize * (Wq.size + Wk.size + Wv.size)

    # Fused path needs identical row counts and weights resident in VMEM;
    # otherwise use the fully tiled K-reduction matmul per projection.
    if Mq != Mk or w_bytes > _VMEM_LIMIT // 4:
        return linear(q2d, Wq), linear(k2d, Wk), linear(v2d, Wv)

    M = Mq
    tm = _seq_tile(M, 512)
    grid = (M // tm,)
    ce = pl.CostEstimate(
        flops=2 * M * (Dq * Nq + Dk * Nk + Dv * Nv),
        transcendentals=0,
        bytes_accessed=int(itemsize * (q2d.size + k2d.size + v2d.size
                                       + Wq.size + Wk.size + Wv.size
                                       + M * (Nq + Nk + Nv))),
    )
    return pl.pallas_call(
        _qkv_proj_kernel,
        out_shape=(
            jax.ShapeDtypeStruct((M, Nq), q2d.dtype),
            jax.ShapeDtypeStruct((M, Nk), k2d.dtype),
            jax.ShapeDtypeStruct((M, Nv), v2d.dtype),
        ),
        grid_spec=pltpu.PrefetchScalarGridSpec(
            num_scalar_prefetch=0,
            grid=grid,
            in_specs=[
                pl.BlockSpec((tm, Dq), lambda i: (i, 0)),
                pl.BlockSpec((tm, Dk), lambda i: (i, 0)),
                pl.BlockSpec((tm, Dv), lambda i: (i, 0)),
                pl.BlockSpec((Dq, Nq), lambda i: (0, 0)),
                pl.BlockSpec((Dk, Nk), lambda i: (0, 0)),
                pl.BlockSpec((Dv, Nv), lambda i: (0, 0)),
            ],
            out_specs=(
                pl.BlockSpec((tm, Nq), lambda i: (i, 0)),
                pl.BlockSpec((tm, Nk), lambda i: (i, 0)),
                pl.BlockSpec((tm, Nv), lambda i: (i, 0)),
            ),
        ),
        compiler_params=pltpu.CompilerParams(
            dimension_semantics=("parallel",),
            vmem_limit_bytes=_VMEM_LIMIT,
        ),
        cost_estimate=ce,
    )(q2d, k2d, v2d, Wq, Wk, Wv)


# ----------------------------------------------------------------------------
# Flash-style scaled dot-product attention with masked (online) softmax.
# Grid = (B*H, Tq-tiles, Tk-tiles); Tk axis is the (arbitrary) reduction axis.
# ----------------------------------------------------------------------------
def _flash_attn_kernel(scale, vl_ref, q_ref, k_ref, v_ref, o_ref,
                       m_sc, l_sc, acc_sc):
    bh = pl.program_id(0)
    ki = pl.program_id(2)
    tk = k_ref.shape[1]

    @pl.when(ki == 0)
    def _():
        m_sc[...] = jnp.full_like(m_sc, -jnp.inf)
        l_sc[...] = jnp.zeros_like(l_sc)
        acc_sc[...] = jnp.zeros_like(acc_sc)

    # Fold 1/sqrt(d) into q (tq*d elems) instead of the (tq, tk) scores.
    q = q_ref[0] * jnp.asarray(scale, q_ref.dtype)                  # (tq, d)
    # QK^T via transposed contraction — no k.T materialization.
    s = lax.dot_general(q, k_ref[0],
                        dimension_numbers=(((1,), (1,)), ((), ())),
                        preferred_element_type=jnp.float32)         # (tq, tk)

    # sequence_mask: key positions >= valid_len get -1e6 before softmax.
    vl = vl_ref[bh]
    col = ki * tk + lax.broadcasted_iota(jnp.int32, s.shape, 1)
    s = jnp.where(col < vl, s, jnp.float32(-1000000.0))

    # Online softmax update (all f32).
    m_prev = m_sc[...]
    m_new = jnp.maximum(m_prev, jnp.max(s, axis=-1, keepdims=True))
    alpha = jnp.exp(m_prev - m_new)
    p = jnp.exp(s - m_new)
    l_sc[...] = alpha * l_sc[...] + jnp.sum(p, axis=-1, keepdims=True)
    acc_sc[...] = alpha * acc_sc[...] + jnp.dot(
        p.astype(v_ref.dtype), v_ref[0], preferred_element_type=jnp.float32)
    m_sc[...] = m_new

    @pl.when(ki == pl.num_programs(2) - 1)
    def _():
        l = l_sc[...]
        r = pl.reciprocal(l, approx=True)      # EUP, off the VALU
        r = r * (2.0 - l * r)                  # one Newton step -> f32 accuracy
        o_ref[0] = (acc_sc[...] * r).astype(o_ref.dtype)


def dot_product_attention(q, k, v, valid_lens, *, tq_target=256, tk_target=512):
    """q: (B*H, Tq, d), k/v: (B*H, Tk, d), valid_lens: (B*H,) int32 -> (B*H, Tq, d)."""
    BH, Tq, d = q.shape
    Tk = k.shape[1]
    tq = _seq_tile(Tq, tq_target)
    tk = _seq_tile(Tk, tk_target)
    scale = 1.0 / math.sqrt(d)
    kernel = functools.partial(_flash_attn_kernel, scale)

    grid_spec = pltpu.PrefetchScalarGridSpec(
        num_scalar_prefetch=1,
        grid=(BH, Tq // tq, Tk // tk),
        in_specs=[
            pl.BlockSpec((1, tq, d), lambda bh, qi, ki, vl: (bh, qi, 0)),
            pl.BlockSpec((1, tk, d), lambda bh, qi, ki, vl: (bh, ki, 0)),
            pl.BlockSpec((1, tk, d), lambda bh, qi, ki, vl: (bh, ki, 0)),
        ],
        out_specs=pl.BlockSpec((1, tq, d), lambda bh, qi, ki, vl: (bh, qi, 0)),
        scratch_shapes=[
            pltpu.VMEM((tq, 1), jnp.float32),   # running max
            pltpu.VMEM((tq, 1), jnp.float32),   # running denominator
            pltpu.VMEM((tq, d), jnp.float32),   # output accumulator
        ],
    )
    itemsize = q.dtype.itemsize
    ce = pl.CostEstimate(
        flops=4 * BH * Tq * Tk * d,                         # QK^T + PV
        transcendentals=BH * Tq * Tk,                       # exp
        bytes_accessed=int(itemsize * (q.size + k.size + v.size + BH * Tq * d)),
    )
    return pl.pallas_call(
        kernel,
        out_shape=jax.ShapeDtypeStruct((BH, Tq, d), q.dtype),
        grid_spec=grid_spec,
        compiler_params=pltpu.CompilerParams(
            dimension_semantics=("parallel", "parallel", "arbitrary"),
            vmem_limit_bytes=_VMEM_LIMIT,
        ),
        cost_estimate=ce,
    )(valid_lens, q, k, v)


# ----------------------------------------------------------------------------
# Full multi-head attention forward (matches the PyTorch module, eval mode).
# ----------------------------------------------------------------------------
def multi_head_attention(queries, keys, values, valid_lens, params, num_heads):
    Wq, Wk, Wv, Wo = params["W_q"], params["W_k"], params["W_v"], params["W_o"]
    B, Tq, Dq = queries.shape
    Tk = keys.shape[1]
    HD = Wq.shape[1]
    d = HD // num_heads

    # Fused, M-gridded Q/K/V projection.
    qp, kp, vp = qkv_projection(
        queries.reshape(B * Tq, Dq),
        keys.reshape(B * Tk, keys.shape[2]),
        values.reshape(B * Tk, values.shape[2]),
        Wq, Wk, Wv,
    )

    # Head split: (B*T, H*d) -> (B*H, T, d).  One XLA transpose each way.
    qh = qp.reshape(B, Tq, num_heads, d).transpose(0, 2, 1, 3).reshape(B * num_heads, Tq, d)
    kh = kp.reshape(B, Tk, num_heads, d).transpose(0, 2, 1, 3).reshape(B * num_heads, Tk, d)
    vh = vp.reshape(B, Tk, num_heads, d).transpose(0, 2, 1, 3).reshape(B * num_heads, Tk, d)

    if valid_lens is None:
        vl = jnp.full((B * num_heads,), Tk, dtype=jnp.int32)
    else:
        # torch.repeat_interleave(valid_lens, num_heads, dim=0)
        vl = jnp.repeat(valid_lens.astype(jnp.int32), num_heads, axis=0)

    out = dot_product_attention(qh, kh, vh, vl)                     # (B*H, Tq, d)
    out_concat = out.reshape(B, num_heads, Tq, d).transpose(0, 2, 1, 3).reshape(B * Tq, HD)

    y = linear(out_concat, Wo)
    return y.reshape(B, Tq, Wo.shape[1])


# ----------------------------------------------------------------------------
# Pure-JAX reference (mirrors the PyTorch module) for correctness checking.
# ----------------------------------------------------------------------------
def transpose_qkv(X, num_heads):
    B, T, _ = X.shape
    X = X.reshape(B, T, num_heads, -1).transpose(0, 2, 1, 3)
    return X.reshape(B * num_heads, T, -1)


def transpose_output(X, num_heads):
    BH, T, d = X.shape
    B = BH // num_heads
    X = X.reshape(B, num_heads, T, d).transpose(0, 2, 1, 3)
    return X.reshape(B, T, num_heads * d)


def ref_multi_head_attention(queries, keys, values, valid_lens, params, num_heads):
    Wq, Wk, Wv, Wo = params["W_q"], params["W_k"], params["W_v"], params["W_o"]
    q = transpose_qkv(queries @ Wq, num_heads)
    k = transpose_qkv(keys @ Wk, num_heads)
    v = transpose_qkv(values @ Wv, num_heads)
    d = q.shape[-1]
    scores = jnp.einsum("bqd,bkd->bqk", q, k) / math.sqrt(d)
    vl = jnp.repeat(valid_lens.astype(jnp.int32), num_heads, axis=0)
    mask = jnp.arange(scores.shape[-1])[None, None, :] < vl[:, None, None]
    scores = jnp.where(mask, scores, -1000000.0)
    w = jax.nn.softmax(scores, axis=-1)
    out = jnp.einsum("bqk,bkd->bqd", w, v)
    return transpose_output(out, num_heads) @ Wo


if __name__ == "__main__":
    # Module hyper-params (per the PyTorch __init__):
    key_size = query_size = value_size = 16
    num_hiddens = 16   # per-head dim; W_q maps to num_hiddens * num_heads
    num_heads = 2
    batch, seq_q, seq_k = 2, 8, 8

    rng = jax.random.PRNGKey(0)
    k1, k2, k3, k4, k5, k6, k7 = jax.random.split(rng, 7)

    scale = 0.1
    params = {
        "W_q": scale * jax.random.normal(k1, (query_size, num_hiddens * num_heads), jnp.float32),
        "W_k": scale * jax.random.normal(k2, (key_size, num_hiddens * num_heads), jnp.float32),
        "W_v": scale * jax.random.normal(k3, (value_size, num_hiddens * num_heads), jnp.float32),
        "W_o": scale * jax.random.normal(k4, (num_hiddens * num_heads, num_hiddens), jnp.float32),
    }

    queries = jax.random.normal(k5, (batch, seq_q, query_size), jnp.float32)
    keys = jax.random.normal(k6, (batch, seq_k, key_size), jnp.float32)
    values = jax.random.normal(k7, (batch, seq_k, value_size), jnp.float32)
    valid_lens = jnp.array([3, 6], dtype=jnp.int32)  # per-sequence lengths

    out = multi_head_attention(queries, keys, values, valid_lens, params, num_heads)
    out = jax.block_until_ready(out)

    ref = ref_multi_head_attention(queries, keys, values, valid_lens, params, num_heads)
    assert out.shape == (batch, seq_q, num_hiddens)
    assert jnp.allclose(out, ref, atol=1e-4, rtol=1e-4), "mismatch vs reference"

    print("KERNEL_OK")
</pallas_src>

<mosaic_0001>
module attributes {stable_mosaic.version = 11 : i64} {
  func.func @_qkv_proj_kernel(%arg0: i32, %arg1: memref<16x16xf32, #tpu.memory_space<vmem>>, %arg2: memref<16x16xf32, #tpu.memory_space<vmem>>, %arg3: memref<16x16xf32, #tpu.memory_space<vmem>>, %arg4: memref<16x32xf32, #tpu.memory_space<vmem>>, %arg5: memref<16x32xf32, #tpu.memory_space<vmem>>, %arg6: memref<16x32xf32, #tpu.memory_space<vmem>>, %arg7: memref<16x32xf32, #tpu.memory_space<vmem>>, %arg8: memref<16x32xf32, #tpu.memory_space<vmem>>, %arg9: memref<16x32xf32, #tpu.memory_space<vmem>>) attributes {dimension_semantics = [#tpu.dimension_semantics<parallel>], iteration_bounds = array<i64: 1>, scalar_prefetch = 0 : i64, scratch_operands = 0 : i64, tpu.core_type = #tpu.core_type<tc>, window_params = [{transform_indices = @transform_0, window_bounds = array<i64: 16, 16>}, {transform_indices = @transform_1, window_bounds = array<i64: 16, 16>}, {transform_indices = @transform_2, window_bounds = array<i64: 16, 16>}, {pipeline_mode = #tpu.pipeline_mode<synchronous>, transform_indices = @transform_3, window_bounds = array<i64: 16, 32>}, {pipeline_mode = #tpu.pipeline_mode<synchronous>, transform_indices = @transform_4, window_bounds = array<i64: 16, 32>}, {pipeline_mode = #tpu.pipeline_mode<synchronous>, transform_indices = @transform_5, window_bounds = array<i64: 16, 32>}, {transform_indices = @transform_6, window_bounds = array<i64: 16, 32>}, {transform_indices = @transform_7, window_bounds = array<i64: 16, 32>}, {transform_indices = @transform_8, window_bounds = array<i64: 16, 32>}]} {
    %c0 = arith.constant 0 : index
    %c0_0 = arith.constant 0 : index
    %0 = vector.load %arg1[%c0, %c0_0] : memref<16x16xf32, #tpu.memory_space<vmem>>, vector<16x16xf32>
    %c0_1 = arith.constant 0 : index
    %c0_2 = arith.constant 0 : index
    %1 = vector.load %arg4[%c0_1, %c0_2] : memref<16x32xf32, #tpu.memory_space<vmem>>, vector<16x32xf32>
    %cst = arith.constant dense<0.000000e+00> : vector<16x32xf32>
    %2 = tpu.matmul %0, %1, %cst {dimension_numbers = #tpu.dot_dimension_numbers<[1], [0], [0], [1], [0, 0, 1, 1], [], []>} : vector<16x16xf32>, vector<16x32xf32>, vector<16x32xf32> -> vector<16x32xf32>
    %c0_3 = arith.constant 0 : index
    %c0_4 = arith.constant 0 : index
    %3 = vector.load %arg7[%c0_3, %c0_4] : memref<16x32xf32, #tpu.memory_space<vmem>>, vector<16x32xf32>
    tpu.vector_store %arg7[%c0_3, %c0_4], %2 {strides = array<i32>} : memref<16x32xf32, #tpu.memory_space<vmem>>, vector<16x32xf32>,
    %c0_5 = arith.constant 0 : index
    %c0_6 = arith.constant 0 : index
    %4 = vector.load %arg2[%c0_5, %c0_6] : memref<16x16xf32, #tpu.memory_space<vmem>>, vector<16x16xf32>
    %c0_7 = arith.constant 0 : index
    %c0_8 = arith.constant 0 : index
    %5 = vector.load %arg5[%c0_7, %c0_8] : memref<16x32xf32, #tpu.memory_space<vmem>>, vector<16x32xf32>
    %cst_9 = arith.constant dense<0.000000e+00> : vector<16x32xf32>
    %6 = tpu.matmul %4, %5, %cst_9 {dimension_numbers = #tpu.dot_dimension_numbers<[1], [0], [0], [1], [0, 0, 1, 1], [], []>} : vector<16x16xf32>, vector<16x32xf32>, vector<16x32xf32> -> vector<16x32xf32>
    %c0_10 = arith.constant 0 : index
    %c0_11 = arith.constant 0 : index
    %7 = vector.load %arg8[%c0_10, %c0_11] : memref<16x32xf32, #tpu.memory_space<vmem>>, vector<16x32xf32>
    tpu.vector_store %arg8[%c0_10, %c0_11], %6 {strides = array<i32>} : memref<16x32xf32, #tpu.memory_space<vmem>>, vector<16x32xf32>,
    %c0_12 = arith.constant 0 : index
    %c0_13 = arith.constant 0 : index
    %8 = vector.load %arg3[%c0_12, %c0_13] : memref<16x16xf32, #tpu.memory_space<vmem>>, vector<16x16xf32>
    %c0_14 = arith.constant 0 : index
    %c0_15 = arith.constant 0 : index
    %9 = vector.load %arg6[%c0_14, %c0_15] : memref<16x32xf32, #tpu.memory_space<vmem>>, vector<16x32xf32>
    %cst_16 = arith.constant dense<0.000000e+00> : vector<16x32xf32>
    %10 = tpu.matmul %8, %9, %cst_16 {dimension_numbers = #tpu.dot_dimension_numbers<[1], [0], [0], [1], [0, 0, 1, 1], [], []>} : vector<16x16xf32>, vector<16x32xf32>, vector<16x32xf32> -> vector<16x32xf32>
    %c0_17 = arith.constant 0 : index
    %c0_18 = arith.constant 0 : index
    %11 = vector.load %arg9[%c0_17, %c0_18] : memref<16x32xf32, #tpu.memory_space<vmem>>, vector<16x32xf32>
    tpu.vector_store %arg9[%c0_17, %c0_18], %10 {strides = array<i32>} : memref<16x32xf32, #tpu.memory_space<vmem>>, vector<16x32xf32>,
    return
  }
  func.func @transform_0(%arg0: i32) -> (i32, i32) {
    %c0_i32 = arith.constant 0 : i32
    %c0_i32_0 = arith.constant 0 : i32
    return %arg0, %c0_i32 : i32, i32
  }
  func.func @transform_1(%arg0: i32) -> (i32, i32) {
    %c0_i32 = arith.constant 0 : i32
    %c0_i32_0 = arith.constant 0 : i32
    return %arg0, %c0_i32 : i32, i32
  }
  func.func @transform_2(%arg0: i32) -> (i32, i32) {
    %c0_i32 = arith.constant 0 : i32
    %c0_i32_0 = arith.constant 0 : i32
    return %arg0, %c0_i32 : i32, i32
  }
  func.func @transform_3(%arg0: i32) -> (i32, i32) {
    %c0_i32 = arith.constant 0 : i32
    %c0_i32_0 = arith.constant 0 : i32
    %c0_i32_1 = arith.constant 0 : i32
    return %c0_i32, %c0_i32_0 : i32, i32
  }
  func.func @transform_4(%arg0: i32) -> (i32, i32) {
    %c0_i32 = arith.constant 0 : i32
    %c0_i32_0 = arith.constant 0 : i32
    %c0_i32_1 = arith.constant 0 : i32
    return %c0_i32, %c0_i32_0 : i32, i32
  }
  func.func @transform_5(%arg0: i32) -> (i32, i32) {
    %c0_i32 = arith.constant 0 : i32
    %c0_i32_0 = arith.constant 0 : i32
    %c0_i32_1 = arith.constant 0 : i32
    return %c0_i32, %c0_i32_0 : i32, i32
  }
  func.func @transform_6(%arg0: i32) -> (i32, i32) {
    %c0_i32 = arith.constant 0 : i32
    %c0_i32_0 = arith.constant 0 : i32
    return %arg0, %c0_i32 : i32, i32
  }
  func.func @transform_7(%arg0: i32) -> (i32, i32) {
    %c0_i32 = arith.constant 0 : i32
    %c0_i32_0 = arith.constant 0 : i32
    return %arg0, %c0_i32 : i32, i32
  }
  func.func @transform_8(%arg0: i32) -> (i32, i32) {
    %c0_i32 = arith.constant 0 : i32
    %c0_i32_0 = arith.constant 0 : i32
    return %arg0, %c0_i32 : i32, i32
  }
}

</mosaic_0001>

<bundles_post_ra>
// kernel: tpu_custom_call.1
= control target key start
LH: loop header
LB: loop body
LE: loop exit
PB: predicated region body
PF: predicated region fallthrough
CT: control target
= control target key end

     0   :  { %14 = vsyncpa [#allocation3], 0  ;;  %s877_s0 = inlined_call_operand.hbm [shape: f32[16,16], index: 0, kind: input, shape index: {}]   ;;  %s878_s1 = inlined_call_operand.hbm [shape: f32[16,16], index: 1, kind: input, shape index: {}]   ;;  %s879_s2 = inlined_call_operand.hbm [shape: f32[16,16], index: 2, kind: input, shape index: {}]   ;;  %s880_s3 = inlined_call_operand.hbm [shape: f32[16,32], index: 3, kind: input, shape index: {}]   ;;  %s881_s4 = inlined_call_operand.hbm [shape: f32[16,32], index: 4, kind: input, shape index: {}]   ;;  %s882_s5 = inlined_call_operand.vmem [shape: f32[16,32], index: 5, kind: input, shape index: {}]   ;;  %s883_s6 = inlined_call_operand.hbm [shape: f32[16,32], index: 6, kind: output, shape index: {0}]   ;;  %s884_s7 = inlined_call_operand.hbm [shape: f32[16,32], index: 7, kind: output, shape index: {1}]   ;;  %s885_s8 = inlined_call_operand.hbm [shape: f32[16,32], index: 8, kind: output, shape index: {2}]  }
   0x1   :  { %15 = vsyncpa [#allocation6], 0 }
   0x2   :  { %16 = vsyncpa [#allocation9], 0 }
   0x3   :  { %17 = vsyncpa [#allocation4], 0 }
   0x4   :  { %18 = vsyncpa [#allocation13], 0  ;;  %s656_s27 = smov [#allocation5]   ;;  %s657_s29 = smov [#allocation8]  }
   0x5   :  { %s36_s28 = sshll.u32 %s656_s27, 4  ;;  %s60_s30 = sshll.u32 %s657_s29, 4  ;;  %s37_s28 = int_to_ptr.vmem [resolvable:$true] %s36_s28  ;;  %s711_s30 = int_to_ptr.vmem [resolvable:$true] %s60_s30 }
   0x6   :  { %s470_s11 = scalar_lea.hbm %s878_s1, 256 }
   0x7   :  { %p471_p0 = scmp.ne.s32.totalorder %s878_s1, %s470_s11  ;;  %p474_p1 = scmp.lt.u32.totalorder %s470_s11, %s878_s1 }
   0x9   :  { %p476_p2 = pnand %p474_p1, %p471_p0 }
   0xb   :  { %479 = shalt.err (!%p476_p2)
}
   0xc   :  { %s480_s16 = scalar_lea.vmem %s37_s28, 256  ;;  %p485_p4 = scmp.lt.s32.totalorder %s37_s28, %s37_s28 }
   0xd   :  { %p481_p3 = scmp.ne.s32.totalorder %s37_s28, %s480_s16  ;;  %p486_p5 = scmp.lt.s32.totalorder %s480_s16, %s480_s16 }
   0xf   :  { %p487_p6 = por %p486_p5, %p485_p4 }
  0x11   :  { %p488_p7 = pnand %p487_p6, %p481_p3 }
  0x13   :  { %491 = shalt.err (!%p488_p7)
}
  0x14   :  { %s658_s17 = smov 128   ;;  %s659_s18 = smov 8  }
  0x15   :  { %42 = dma.hbm_to_vmem [thread:$0]  %s878_s1, 256, %s37_s28, [#allocation6], %s658_s17, %s658_s17, %s659_s18  }
  0x16   :  { %s492_s23 = scalar_lea.hbm %s880_s3, 256 }
  0x17   :  { %p493_p8 = scmp.ne.s32.totalorder %s880_s3, %s492_s23  ;;  %p496_p9 = scmp.lt.u32.totalorder %s492_s23, %s880_s3 }
  0x19   :  { %p498_p10 = pnand %p496_p9, %p493_p8 }
  0x1b   :  { %501 = shalt.err (!%p498_p10)
}
  0x1c   :  { %s502_s29 = scalar_lea.vmem %s711_s30, 256  ;;  %p507_p12 = scmp.lt.s32.totalorder %s711_s30, %s711_s30 }
  0x1d   :  { %p503_p11 = scmp.ne.s32.totalorder %s711_s30, %s502_s29  ;;  %p508_p13 = scmp.lt.s32.totalorder %s502_s29, %s502_s29 }
  0x1f   :  { %p509_p0 = por %p508_p13, %p507_p12 }
  0x21   :  { %p510_p1 = pnand %p509_p0, %p503_p11 }
  0x23   :  { %513 = shalt.err (!%p510_p1)
}
  0x24   :  { %66 = dma.hbm_to_vmem [thread:$0]  %s880_s3, 256, %s711_s30, [#allocation9], %s658_s17, %s658_s17, %s659_s18  }
  0x25   :  { %s660_s9 = smov [#allocation2]   ;;  %s661_s11 = smov [#allocation7]  }
  0x26   :  { %s24_s10 = sshll.u32 %s660_s9, 4  ;;  %s48_s12 = sshll.u32 %s661_s11, 4  ;;  %s25_s10 = int_to_ptr.vmem [resolvable:$true] %s24_s10  ;;  %s748_s12 = int_to_ptr.vmem [resolvable:$true] %s48_s12 }
  0x27   :  { %s514_s15 = scalar_lea.hbm %s877_s0, 256 }
  0x28   :  { %p515_p2 = scmp.ne.s32.totalorder %s877_s0, %s514_s15  ;;  %p518_p3 = scmp.lt.u32.totalorder %s514_s15, %s877_s0 }
  0x2a   :  { %p520_p4 = pnand %p518_p3, %p515_p2 }
  0x2c   :  { %523 = shalt.err (!%p520_p4)
}
  0x2d   :  { %s524_s3 = scalar_lea.vmem %s25_s10, 256  ;;  %p529_p6 = scmp.lt.s32.totalorder %s25_s10, %s25_s10 }
  0x2e   :  { %p525_p5 = scmp.ne.s32.totalorder %s25_s10, %s524_s3  ;;  %p530_p7 = scmp.lt.s32.totalorder %s524_s3, %s524_s3 }
  0x30   :  { %p531_p8 = por %p530_p7, %p529_p6 }
  0x32   :  { %p532_p9 = pnand %p531_p8, %p525_p5 }
  0x34   :  { %535 = shalt.err (!%p532_p9)
}
  0x35   :  { %30 = dma.hbm_to_vmem [thread:$0]  %s877_s0, 256, %s25_s10, [#allocation3], %s658_s17, %s658_s17, %s659_s18  }
  0x36   :  { %s536_s25 = scalar_lea.hbm %s879_s2, 256 }
  0x37   :  { %p537_p10 = scmp.ne.s32.totalorder %s879_s2, %s536_s25  ;;  %p540_p11 = scmp.lt.u32.totalorder %s536_s25, %s879_s2 }
  0x39   :  { %p542_p12 = pnand %p540_p11, %p537_p10 }
  0x3b   :  { %545 = shalt.err (!%p542_p12)
}
  0x3c   :  { %s546_s28 = scalar_lea.vmem %s748_s12, 256  ;;  %p551_p0 = scmp.lt.s32.totalorder %s748_s12, %s748_s12 }
  0x3d   :  { %p547_p13 = scmp.ne.s32.totalorder %s748_s12, %s546_s28  ;;  %p552_p1 = scmp.lt.s32.totalorder %s546_s28, %s546_s28 }
  0x3f   :  { %p553_p2 = por %p552_p1, %p551_p0 }
  0x41   :  { %p554_p3 = pnand %p553_p2, %p547_p13 }
  0x43   :  { %557 = shalt.err (!%p554_p3)
}
  0x44   :  { %54 = dma.hbm_to_vmem [thread:$0]  %s879_s2, 256, %s748_s12, [#allocation6], %s658_s17, %s658_s17, %s659_s18  }
  0x45   :  { %s662_s10 = smov [#allocation10]   ;;  %s558_s15 = scalar_lea.hbm %s881_s4, 256 }
  0x46   :  { %s72_s11 = sshll.u32 %s662_s10, 4  ;;  %p559_p4 = scmp.ne.s32.totalorder %s881_s4, %s558_s15  ;;  %s73_s11 = int_to_ptr.vmem [resolvable:$true] %s72_s11 }
  0x47   :  { %p562_p5 = scmp.lt.u32.totalorder %s558_s15, %s881_s4 }
  0x49   :  { %p564_p6 = pnand %p562_p5, %p559_p4 }
  0x4b   :  { %567 = shalt.err (!%p564_p6)
}
  0x4c   :  { %s568_s3 = scalar_lea.vmem %s73_s11, 256  ;;  %p573_p8 = scmp.lt.s32.totalorder %s73_s11, %s73_s11 }
  0x4d   :  { %p569_p7 = scmp.ne.s32.totalorder %s73_s11, %s568_s3  ;;  %p574_p9 = scmp.lt.s32.totalorder %s568_s3, %s568_s3 }
  0x4f   :  { %p575_p10 = por %p574_p9, %p573_p8 }
  0x51   :  { %p576_p11 = pnand %p575_p10, %p569_p7 }
  0x53   :  { %579 = shalt.err (!%p576_p11)
}
  0x54   :  { %78 = dma.hbm_to_vmem [thread:$0]  %s881_s4, 256, %s73_s11, [#allocation9], %s658_s17, %s658_s17, %s659_s18  }
  0x55   :  { %646 = dma.done.wait [#allocation3], 256  }
  0x56   :  { %647 = vsyncadd [#allocation3], 4294967040 }
  0x57   :  { %648 = dma.done.wait [#allocation6], 512  }
  0x58   :  { %649 = vsyncadd [#allocation6], 4294966784 }
  0x59   :  { %650 = dma.done.wait [#allocation9], 512  }
  0x5a   :  { %651 = vsyncadd [#allocation9], 4294966784  ;;  %vm100_vm0 = vcmask 130048   ;;  %v98_v0 = vld [vmem:[#allocation8] sm:$0xff]  ;;  %v99_v1 = vld [vmem:[#allocation8 + $0x8] sm:$0xff]  ;;  %vm182_vm1 = vcmask 261120  }
  0x5b   :  { %v96_v2 = vld [vmem:[#allocation2] sm:$0xff]  ;;  %v448_v3 = vpack.c.bf16 %v99_v1, %v98_v0  ;;  %v188_v5 = vld [vmem:[#allocation10 + $0x8] sm:$0xff]  ;;  %v185_v9 = vld [vmem:[#allocation5] sm:$0xff]  ;;  %s664_s25 = smov [#allocation12]   ;;  %s665_s27 = smov [#allocation14]  }
  0x5c   :  { %431 = vmatprep.mubr.msk.f32.mxu0 %vm100_vm0, %v96_v2  ;;  %v187_v4 = vld [vmem:[#allocation10] sm:$0xff]  ;;  %v275_v8 = vld [vmem:[%s882_s5 + $0x8] sm:$0xff]  ;;  %438 = vmatprep.mubr.msk.f32.mxu1 %vm100_vm0, %v185_v9  ;;  %v186_v12 = vld [vmem:[#allocation5 + $0x8] sm:$0xff]  ;;  %s376_s26 = sshll.u32 %s664_s25, 4  ;;  %s388_s29 = sshll.u32 %s665_s27, 4  ;;  %s813_s26 = int_to_ptr.vmem [resolvable:$true] %s376_s26  ;;  %s817_s29 = int_to_ptr.vmem [resolvable:$true] %s388_s29 }
  0x5d   :  { %v452_v6 = vpack.c.bf16 %v188_v5, %v187_v4  ;;  %v274_v7 = vld [vmem:[%s882_s5] sm:$0xff]  ;;  %449 = vmatprep.subr.bf16.mxu0 %v448_v3  ;;  %v97_v11 = vld [vmem:[#allocation2 + $0x8] sm:$0xff]  ;;  %s663_s5 = smov [#allocation11]  }
  0x5e   :  { %v456_v10 = vpack.c.bf16 %v275_v8, %v274_v7  ;;  %451 = vmatpush3.bf16.msra.mxu0 %v448_v3  ;;  %v272_v13 = vld [vmem:[#allocation7] sm:$0xff]  ;;  %v273_v14 = vld [vmem:[#allocation7 + $0x8] sm:$0xff]  ;;  %s364_s24 = sshll.u32 %s663_s5, 4  ;;  %s365_s24 = int_to_ptr.vmem [resolvable:$true] %s364_s24 }
  0x5f   :  { %453 = vmatprep.subr.bf16.mxu1 %v452_v6  ;;  %s580_s1 = scalar_lea.vmem %s365_s24, 256  ;;  %p585_p13 = scmp.lt.s32.totalorder %s365_s24, %s365_s24 }
  0x60   :  { %455 = vmatpush3.bf16.msra.mxu1 %v452_v6  ;;  %457 = vmatprep.subr.bf16.mxu0 %v456_v10  ;;  %p581_p12 = scmp.ne.s32.totalorder %s365_s24, %s580_s1  ;;  %p586_p0 = scmp.lt.s32.totalorder %s580_s1, %s580_s1 }
  0x61   :  { %432 = vmatmul.mubr.msk.f32.vlgmr.msra.gmra.mrb[0].mxu0 %vm100_vm0, %v97_v11 }
  0x62   :  { %459 = vmatpush3.bf16.msra.mxu0 %v456_v10  ;;  %445 = vmatprep.mubr.msk.f32.mxu0 %vm100_vm0, %v272_v13  ;;  %p587_p1 = por %p586_p0, %p585_p13 }
  0x63   :  { %439 = vmatmul.mubr.msk.f32.vlgmr.msra.gmra.mrb[0].mxu1 %vm100_vm0, %v186_v12 }
  0x64   :  { %p588_p2 = pnand %p587_p1, %p581_p12 }
  0x65   :  { %446 = vmatmul.mubr.msk.f32.vlgmr.msra.gmra.mrb[2].mxu0 %vm100_vm0, %v273_v14 }
 0x134   :  { %v433_v15 = vpop.f32.mrb[0].mxu0 }
 0x135   :  { %184 = vst.msk [vmem:[#allocation11 + $0x8] sm:$0xff] %vm182_vm1, %v433_v15  ;;  %v173_v16 = vpop.f32.mrb[1].mxu0 }
 0x136   :  { %v440_v17 = vpop.f32.mrb[0].mxu1  ;;  %183 = vst.msk [vmem:[#allocation11] sm:$0xff] %vm182_vm1, %v173_v16 }
 0x137   :  { %271 = vst.msk [vmem:[#allocation12 + $0x8] sm:$0xff] %vm182_vm1, %v440_v17  ;;  %v261_v18 = vpop.f32.mrb[1].mxu1 }
 0x138   :  { %270 = vst.msk [vmem:[#allocation12] sm:$0xff] %vm182_vm1, %v261_v18 }
 0x139   :  { %591 = shalt.err (!%p588_p2)
}
 0x13a   :  { %s592_s9 = scalar_lea.hbm %s883_s6, 256 }
 0x13b   :  { %p593_p3 = scmp.ne.s32.totalorder %s883_s6, %s592_s9  ;;  %p596_p4 = scmp.lt.u32.totalorder %s592_s9, %s883_s6 }
 0x13d   :  { %p598_p5 = pnand %p596_p4, %p593_p3 }
 0x13f   :  { %601 = shalt.err (!%p598_p5)
}
 0x140   :  { %370 = dma.vmem_to_hbm [thread:$0]  %s365_s24, 256, %s883_s6, [#allocation4], %s658_s17, %s658_s17, %s659_s18   ;;  %v447_v19 = vpop.f32.mrb[2].mxu0 }
 0x141   :  { %s602_s19 = scalar_lea.vmem %s813_s26, 256  ;;  %p607_p7 = scmp.lt.s32.totalorder %s813_s26, %s813_s26 }
 0x142   :  { %p603_p6 = scmp.ne.s32.totalorder %s813_s26, %s602_s19  ;;  %p608_p8 = scmp.lt.s32.totalorder %s602_s19, %s602_s19 }
 0x144   :  { %p609_p9 = por %p608_p8, %p607_p7 }
 0x146   :  { %p610_p10 = pnand %p609_p9, %p603_p6 }
 0x148   :  { %613 = shalt.err (!%p610_p10)
}
 0x149   :  { %s614_s3 = scalar_lea.hbm %s884_s7, 256 }
 0x14a   :  { %p615_p11 = scmp.ne.s32.totalorder %s884_s7, %s614_s3  ;;  %p618_p12 = scmp.lt.u32.totalorder %s614_s3, %s884_s7 }
 0x14c   :  { %p620_p13 = pnand %p618_p12, %p615_p11 }
 0x14e   :  { %623 = shalt.err (!%p620_p13)
}
 0x14f   :  { %382 = dma.vmem_to_hbm [thread:$0]  %s813_s26, 256, %s884_s7, [#allocation13], %s658_s17, %s658_s17, %s659_s18   ;;  %358 = vst.msk [vmem:[#allocation14 + $0x8] sm:$0xff] %vm182_vm1, %v447_v19  ;;  %v348_v20 = vpop.f32.mrb[3].mxu0 }
 0x150   :  { %357 = vst.msk [vmem:[#allocation14] sm:$0xff] %vm182_vm1, %v348_v20  ;;  %s624_s23 = scalar_lea.vmem %s817_s29, 256  ;;  %p629_p1 = scmp.lt.s32.totalorder %s817_s29, %s817_s29 }
 0x151   :  { %p625_p0 = scmp.ne.s32.totalorder %s817_s29, %s624_s23  ;;  %p630_p2 = scmp.lt.s32.totalorder %s624_s23, %s624_s23 }
 0x153   :  { %p631_p3 = por %p630_p2, %p629_p1 }
 0x155   :  { %p632_p4 = pnand %p631_p3, %p625_p0 }
 0x157   :  { %635 = shalt.err (!%p632_p4)
}
 0x158   :  { %s636_s25 = scalar_lea.hbm %s885_s8, 256 }
 0x159   :  { %p637_p5 = scmp.ne.s32.totalorder %s885_s8, %s636_s25  ;;  %p640_p6 = scmp.lt.u32.totalorder %s636_s25, %s885_s8 }
 0x15b   :  { %p642_p7 = pnand %p640_p6, %p637_p5 }
 0x15d   :  { %645 = shalt.err (!%p642_p7)
}
 0x15e   :  { %394 = dma.vmem_to_hbm [thread:$0]  %s817_s29, 256, %s885_s8, [#allocation13], %s658_s17, %s658_s17, %s659_s18  }
 0x15f   :  { %652 = dma.done.wait [#allocation4], 256  }
 0x160   :  { %653 = vsyncadd [#allocation4], 4294967040 }
 0x161   :  { %654 = dma.done.wait [#allocation13], 512  }
 0x162   :  { %655 = vsyncadd [#allocation13], 4294966784 }
 0x163   :  { %404 = vsyncpa [#allocation3], 1 }
 0x164   :  { %405 = vsyncpa [#allocation6], 1 }
 0x165   :  { %406 = vsyncpa [#allocation9], 1 }
 0x166   :  { %407 = vsyncpa [#allocation4], 1 }
 0x167   :  { %408 = vsyncpa [#allocation13], 1 }

</bundles_post_ra>
